<compile_context>
chip_gen: v5e
topology: v5e:2x2
jax: 0.10.0
libtpu: 0.0.40
codegen_flags: <defaults>
</compile_context>

<pallas_src>
import jax
import jax.numpy as jnp
from jax.experimental import pallas as pl
from jax.experimental.pallas import tpu as pltpu

_LANE = 128


def _round_up(x, m):
    return (x + m - 1) // m * m


# ---------------------------------------------------------------------------
# Kernels
# ---------------------------------------------------------------------------
def _encoder_kernel(x_ref, wenc_ref, feat_ref):
    """feat[:, j] += x[:, k] @ w_enc[k, j]; f32 accumulation in the resident
    output block (output block index is constant across the k axis)."""
    k = pl.program_id(1)

    @pl.when(k == 0)
    def _init():
        feat_ref[...] = jnp.zeros_like(feat_ref)

    # x streamed as f32 (no separate convert pass); cast to bf16 right before
    # the MXU, accumulate in f32 directly into the output block.
    feat_ref[...] += jnp.dot(x_ref[...].astype(jnp.bfloat16), wenc_ref[...],
                             preferred_element_type=jnp.float32)


def _head_kernel(feat_ref, w1_ref, b1_ref, w2_ref, b2_ref, logits_ref):
    """Classifier head: x = fc2(relu(fc1(feature))). bf16 MXU inputs, f32
    accumulation, bias adds / ReLU on the VPU in f32, lane-dense output."""
    h = jnp.dot(feat_ref[...].astype(jnp.bfloat16), w1_ref[...],
                preferred_element_type=jnp.float32) + b1_ref[...]
    h = jnp.maximum(h, 0.0)
    logits_ref[...] = jnp.dot(h.astype(jnp.bfloat16), w2_ref[...],
                              preferred_element_type=jnp.float32) + b2_ref[...]


# ---------------------------------------------------------------------------
# One-time frozen-weight preparation (NOT part of the per-call forward path)
# ---------------------------------------------------------------------------
def prepare_frozen_params(w_enc, w1, b1, w2, b2, *, tk=3072, tn=256):
    """Cast the frozen weights to bf16 and pad once at model-build time.

    w_enc: [d_in, enc_dim]   synthetic frozen encoder projection
    w1:    [enc_dim, hidden] fc1 weight       b1: [hidden]
    w2:    [hidden, classes] fc2 weight       b2: [classes]
    """
    d_in, enc_dim = w_enc.shape
    hidden, num_classes = w2.shape

    # Pick legal tile sizes (last-two dims of blocks must be (8,128)-friendly).
    if tn > enc_dim or enc_dim % tn != 0:
        tn = enc_dim
    if d_in <= tk:
        tk = _round_up(d_in, 512)
    d_in_pad = _round_up(d_in, tk)           # zero-pad the contraction dim
    nc_pad = _round_up(num_classes, _LANE)   # lane-dense logits slab

    w_enc_bf = jnp.zeros((d_in_pad, enc_dim), jnp.bfloat16)
    w_enc_bf = w_enc_bf.at[:d_in, :].set(w_enc.astype(jnp.bfloat16))
    w1_bf = w1.astype(jnp.bfloat16)
    b1_f = b1.reshape(1, hidden).astype(jnp.float32)
    w2_bf = jnp.zeros((hidden, nc_pad), jnp.bfloat16)
    w2_bf = w2_bf.at[:, :num_classes].set(w2.astype(jnp.bfloat16))
    b2_f = jnp.zeros((1, nc_pad), jnp.float32)
    b2_f = b2_f.at[:, :num_classes].set(b2.reshape(1, num_classes).astype(jnp.float32))

    return dict(w_enc=w_enc_bf, w1=w1_bf, b1=b1_f, w2=w2_bf, b2=b2_f,
                d_in=d_in, d_in_pad=d_in_pad, enc_dim=enc_dim, hidden=hidden,
                num_classes=num_classes, nc_pad=nc_pad, tk=tk, tn=tn)


# ---------------------------------------------------------------------------
# Forward
# ---------------------------------------------------------------------------
def clip_classifier_forward(x_nchw, params):
    """x_nchw: [B, C, H, W] float32 images.

    Returns (logits [B, num_classes], feature [B, image_encoding_dim])
    mirroring `return (x, feature)` in the PyTorch module.
    """
    B = x_nchw.shape[0]
    d_in = x_nchw.shape[1] * x_nchw.shape[2] * x_nchw.shape[3]
    assert d_in == params["d_in"], "params were prepared for a different input size"

    d_in_pad = params["d_in_pad"]
    enc_dim = params["enc_dim"]
    hidden = params["hidden"]
    nc_pad = params["nc_pad"]
    tk, tn = params["tk"], params["tn"]
    nk = d_in_pad // tk
    nj = enc_dim // tn

    # Flatten; keep f32 in HBM (the bf16 cast happens inside the kernel).
    x_flat = x_nchw.reshape(B, d_in).astype(jnp.float32)
    if d_in_pad != d_in:
        x_flat = jnp.pad(x_flat, ((0, 0), (0, d_in_pad - d_in)))

    # --- frozen encoder: [B, d_in_pad] @ [d_in_pad, enc_dim] -> f32 feature
    feature = pl.pallas_call(
        _encoder_kernel,
        out_shape=jax.ShapeDtypeStruct((B, enc_dim), jnp.float32),
        grid=(nj, nk),
        in_specs=[
            pl.BlockSpec((B, tk), lambda j, k: (0, k)),     # x chunk (f32)
            pl.BlockSpec((tk, tn), lambda j, k: (k, j)),    # w_enc chunk (bf16)
        ],
        out_specs=pl.BlockSpec((B, tn), lambda j, k: (0, j)),  # resident acc
        compiler_params=pltpu.CompilerParams(
            dimension_semantics=("parallel", "arbitrary")),
    )(x_flat, params["w_enc"])

    # --- classifier head: fc1 -> ReLU -> fc2 (tiny, single grid step)
    logits_pad = pl.pallas_call(
        _head_kernel,
        out_shape=jax.ShapeDtypeStruct((B, nc_pad), jnp.float32),
        grid=(1,),
        in_specs=[
            pl.BlockSpec((B, enc_dim), lambda i: (0, 0)),      # feature (f32)
            pl.BlockSpec((enc_dim, hidden), lambda i: (0, 0)),  # w1 (bf16)
            pl.BlockSpec((1, hidden), lambda i: (0, 0)),        # b1 (f32)
            pl.BlockSpec((hidden, nc_pad), lambda i: (0, 0)),   # w2 (bf16)
            pl.BlockSpec((1, nc_pad), lambda i: (0, 0)),        # b2 (f32)
        ],
        out_specs=pl.BlockSpec((B, nc_pad), lambda i: (0, 0)),
        compiler_params=pltpu.CompilerParams(
            dimension_semantics=("arbitrary",)),
    )(feature, params["w1"], params["b1"], params["w2"], params["b2"])

    return logits_pad[:, :params["num_classes"]], feature


# ---------------------------------------------------------------------------
# Demo / correctness check
# ---------------------------------------------------------------------------
if __name__ == "__main__":
    key = jax.random.PRNGKey(0)
    k_x, k_enc, k_w1, k_b1, k_w2, k_b2 = jax.random.split(key, 6)

    # Small image batch, NCHW like the PyTorch CLIP input.
    B, C, H, W = 2, 3, 32, 32
    d_in = C * H * W                       # 3072
    enc_dim, hidden, num_classes = 512, 512, 10

    x = jax.random.normal(k_x, (B, C, H, W), jnp.float32)
    w_enc = jax.random.normal(k_enc, (d_in, enc_dim), jnp.float32) / jnp.sqrt(d_in)
    w1 = jax.random.normal(k_w1, (enc_dim, hidden), jnp.float32) / jnp.sqrt(enc_dim)
    b1 = jax.random.normal(k_b1, (hidden,), jnp.float32) * 0.01
    w2 = jax.random.normal(k_w2, (hidden, num_classes), jnp.float32) / jnp.sqrt(hidden)
    b2 = jax.random.normal(k_b2, (num_classes,), jnp.float32) * 0.01

    # One-time frozen-weight prep (bf16 cast + padding); repeated forward
    # calls reuse these buffers with no per-call conversion pass.
    # tk=1024 here so the small demo exercises the multi-step K reduction;
    # at real CLIP sizes (d_in ~150K) the default tk=3072 is used.
    params = prepare_frozen_params(w_enc, w1, b1, w2, b2, tk=1024, tn=256)

    logits, feature = clip_classifier_forward(x, params)
    jax.block_until_ready((logits, feature))

    # Plain-JAX reference with the same bf16 weight policy / f32 accumulation.
    x_flat = x.reshape(B, d_in)
    feat_ref = jnp.dot(x_flat.astype(jnp.bfloat16), w_enc.astype(jnp.bfloat16),
                       preferred_element_type=jnp.float32)
    h_ref = jnp.maximum(
        jnp.dot(feat_ref.astype(jnp.bfloat16), w1.astype(jnp.bfloat16),
                preferred_element_type=jnp.float32) + b1[None, :], 0.0)
    logits_ref = jnp.dot(h_ref.astype(jnp.bfloat16), w2.astype(jnp.bfloat16),
                         preferred_element_type=jnp.float32) + b2[None, :]

    assert logits.shape == (B, num_classes)
    assert feature.shape == (B, enc_dim)
    assert jnp.allclose(feature, feat_ref, atol=2e-2, rtol=2e-2)
    assert jnp.allclose(logits, logits_ref, atol=3e-2, rtol=3e-2)

    print("KERNEL_OK")
</pallas_src>

<mosaic_0001>
module attributes {stable_mosaic.version = 11 : i64} {
  func.func @_encoder_kernel(%arg0: i32, %arg1: i32, %arg2: memref<2x1024xf32, #tpu.memory_space<vmem>>, %arg3: memref<1024x256xbf16, #tpu.memory_space<vmem>>, %arg4: memref<2x256xf32, #tpu.memory_space<vmem>>) attributes {dimension_semantics = [#tpu.dimension_semantics<parallel>, #tpu.dimension_semantics<arbitrary>], iteration_bounds = array<i64: 2, 3>, scalar_prefetch = 0 : i64, scratch_operands = 0 : i64, tpu.core_type = #tpu.core_type<tc>, window_params = [{transform_indices = @transform_0, window_bounds = array<i64: 2, 1024>}, {transform_indices = @transform_1, window_bounds = array<i64: 1024, 256>}, {transform_indices = @transform_2, window_bounds = array<i64: 2, 256>}]} {
    %c0_i32 = arith.constant 0 : i32
    %0 = arith.cmpi eq, %arg1, %c0_i32 : i32
    %1 = arith.extui %0 : i1 to i32
    %c0_i32_0 = arith.constant 0 : i32
    %2 = arith.cmpi ne, %1, %c0_i32_0 : i32
    scf.if %2 {
      %cst_8 = arith.constant 0.000000e+00 : f32
      %10 = vector.broadcast %cst_8 : f32 to vector<2x256xf32>
      %c0_9 = arith.constant 0 : index
      %c0_10 = arith.constant 0 : index
      %11 = vector.load %arg4[%c0_9, %c0_10] : memref<2x256xf32, #tpu.memory_space<vmem>>, vector<2x256xf32>
      tpu.vector_store %arg4[%c0_9, %c0_10], %10 {strides = array<i32>} : memref<2x256xf32, #tpu.memory_space<vmem>>, vector<2x256xf32>,
    } else {
    }
    %c0 = arith.constant 0 : index
    %c0_1 = arith.constant 0 : index
    %3 = vector.load %arg4[%c0, %c0_1] : memref<2x256xf32, #tpu.memory_space<vmem>>, vector<2x256xf32>
    %c0_2 = arith.constant 0 : index
    %c0_3 = arith.constant 0 : index
    %4 = vector.load %arg2[%c0_2, %c0_3] : memref<2x1024xf32, #tpu.memory_space<vmem>>, vector<2x1024xf32>
    %5 = arith.truncf %4 : vector<2x1024xf32> to vector<2x1024xbf16>
    %c0_4 = arith.constant 0 : index
    %c0_5 = arith.constant 0 : index
    %6 = vector.load %arg3[%c0_4, %c0_5] : memref<1024x256xbf16, #tpu.memory_space<vmem>>, vector<1024x256xbf16>
    %cst = arith.constant dense<0.000000e+00> : vector<2x256xf32>
    %7 = tpu.matmul %5, %6, %cst {dimension_numbers = #tpu.dot_dimension_numbers<[1], [0], [0], [1], [0, 0, 1, 1], [], []>} : vector<2x1024xbf16>, vector<1024x256xbf16>, vector<2x256xf32> -> vector<2x256xf32>
    %8 = arith.addf %3, %7 : vector<2x256xf32>
    %c0_6 = arith.constant 0 : index
    %c0_7 = arith.constant 0 : index
    %9 = vector.load %arg4[%c0_6, %c0_7] : memref<2x256xf32, #tpu.memory_space<vmem>>, vector<2x256xf32>
    tpu.vector_store %arg4[%c0_6, %c0_7], %8 {strides = array<i32>} : memref<2x256xf32, #tpu.memory_space<vmem>>, vector<2x256xf32>,
    return
  }
  func.func @transform_0(%arg0: i32, %arg1: i32) -> (i32, i32) {
    %c0_i32 = arith.constant 0 : i32
    %c0_i32_0 = arith.constant 0 : i32
    return %c0_i32, %arg1 : i32, i32
  }
  func.func @transform_1(%arg0: i32, %arg1: i32) -> (i32, i32) {
    %c0_i32 = arith.constant 0 : i32
    return %arg1, %arg0 : i32, i32
  }
  func.func @transform_2(%arg0: i32, %arg1: i32) -> (i32, i32) {
    %c0_i32 = arith.constant 0 : i32
    %c0_i32_0 = arith.constant 0 : i32
    return %c0_i32, %arg0 : i32, i32
  }
}

</mosaic_0001>

<bundles_post_ra>
// kernel: tpu_custom_call.1
= control target key start
LH: loop header
LB: loop body
LE: loop exit
PB: predicated region body
PF: predicated region fallthrough
CT: control target
= control target key end

     0   :  { %s2967_s0 = inlined_call_operand.hbm [shape: f32[2,3072], index: 0, kind: input, shape index: {}]   ;;  %s2968_s1 = inlined_call_operand.hbm [shape: bf16[3072,512], index: 1, kind: input, shape index: {}]   ;;  %s2969_s2 = inlined_call_operand.hbm [shape: f32[2,512], index: 2, kind: output, shape index: {}]  }
   0x1   :  { %2977 = sst [smem:[#allocation21_spill]] %s2967_s0 }
   0x2   :  { %7 = vsyncpa [#allocation3], 0 }
   0x3   :  { %9 = vsyncpa [#allocation3 + $0x1], 0 }
   0x4   :  { %10 = vsyncpa [#allocation6], 0 }
   0x5   :  { %12 = vsyncpa [#allocation6 + $0x1], 0 }
   0x6   :  { %13 = vsyncpa [#allocation4], 0 }
   0x7   :  { %15 = vsyncpa [#allocation4 + $0x1], 0  ;;  %s2401_s9 = smov 0   ;;  %s2403_s10 = smov 0  }
   0x8   :  { %s2405_s11 = smov 0   ;;  %s2407_s12 = smov 0  }
   0x9   :  { %s2409_s13 = smov 0   ;;  %s2411_s14 = smov 0  }
   0xa   :  { %s2413_s15 = smov 0   ;;  %s2415_s16 = smov 0  }
   0xb   :  { %s2417_s17 = smov 0   ;;  %s2419_s18 = smov 0  }
   0xc   :  { %s2421_s19 = smov 0   ;;  %s2423_s20 = smov 0  }
   0xd   :  { %s2425_s21 = smov 0   ;;  %s2427_s22 = smov 0  }
   0xe LB: > { %2978 = sst [smem:[#allocation11_spill]] %s2328_s9  ;;  %s1370_s23 = sadd.s32 4294967295, %s2380_s22   ;;  %s2380_s22 = sphi %s2427_s22, %s21_s22   ;;  %s2376_s21 = sphi %s2425_s21, %s3017_s21   ;;  %s2372_s20 = sphi %s2423_s20, %s3007_s20   ;;  %s2368_s19 = sphi %s2421_s19, %s3016_s19   ;;  %s2364_s18 = sphi %s2419_s18, %s3006_s18   ;;  %s2360_s17 = sphi %s2417_s17, %s3005_s17   ;;  %s2356_s16 = sphi %s2415_s16, %s3015_s16   ;;  %s2352_s15 = sphi %s2413_s15, %s3014_s15   ;;  %s2348_s14 = sphi %s2411_s14, %s3013_s14   ;;  %s2344_s13 = sphi %s2409_s13, %s3012_s13   ;;  %s2340_s12 = sphi %s2407_s12, %s3011_s12   ;;  %s2336_s11 = sphi %s2405_s11, %s3002_s11   ;;  %s2332_s10 = sphi %s2403_s10, %s3010_s10   ;;  %s2328_s9 = sphi %s2401_s9, %s3009_s9  }
   0xf   : > { %2979 = sst [smem:[#allocation12_spill]] %s2336_s11  ;;  %s1371_s24 = sadd.s32 4294967294, %s2380_s22  }
  0x10   : > { %2980 = sst [smem:[#allocation13_spill]] %s2360_s17  ;;  %s30_s25 = sadd.s32 1, %s2372_s20 }
  0x11   : > { %2981 = sst [smem:[#allocation14_spill]] %s2372_s20  ;;  %s33_s26 = sadd.s32 1, %s2376_s21 }
  0x12   : > { %p31_p0 = scmp.ge.s32.totalorder %s30_s25, 3  ;;  %s40_s27 = sadd.s32 1, %s2360_s17 }
  0x13   : > { %p47_p1 = scmp.ne.s32.totalorder %s2360_s17, %s2356_s16  ;;  %p48_p2 = scmp.eq.s32.totalorder %s2380_s22, 0 }
  0x14   : > { %s3019_s25 = smov (%p31_p0, %s30_s25), 0  ;;  %s3021_s26 = smov (!%p31_p0, %s33_s26), %s2376_s21 }
  0x15   : > { %2982 = sst [smem:[#allocation15_spill]] %s3019_s25  ;;  %s37_s28 = ssub.s32 %s2372_s20, %s3019_s25 }
  0x16   : > { %p2484_p3 = por %p48_p2, %p47_p1  ;;  %p35_p4 = scmp.ge.s32.totalorder %s3021_s26, 2 }
  0x17   : > { %p38_p5 = scmp.eq.s32.totalorder %s37_s28, 0  ;;  %p53_p6 = scmp.ne.s32.totalorder %s2356_s16, %s2352_s15 }
  0x18   : > { %p2491_p7 = scmp.eq.s32.totalorder %s1370_s23, 0  ;;  %s3023_s26 = smov (%p35_p4, %s3021_s26), 0 }
  0x19   : > { %2985 = sst [smem:[#allocation16_spill]] %s3023_s26  ;;  %s64_s5 = ssub.s32 %s2376_s21, %s3023_s26 }
  0x1a   : > { %s2498_s3 = scalar_select %p38_p5, %s2360_s17, %s40_s27  }
  0x1b   : > { %p2502_p8 = por %p2491_p7, %p53_p6  ;;  %s65_s6 = sor.u32 %s64_s5, %s37_s28 }
  0x1c   : > { %2986 = sst [smem:[#allocation17_spill]] %s2498_s3  ;;  %s68_s7 = sadd.s32 1, %s2348_s14 }
  0x1d   : > { %p66_p9 = scmp.eq.s32.totalorder %s65_s6, 0  ;;  %p75_p10 = scmp.ne.s32.totalorder %s2348_s14, %s2344_s13 }
  0x1e   : > { %p81_p11 = scmp.ne.s32.totalorder %s2344_s13, %s2340_s12  ;;  %p92_p12 = scmp.eq.s32.totalorder %s64_s5, 0 }
  0x1f   : > { %s2514_s8 = scalar_select %p66_p9, %s2348_s14, %s68_s7  }
  0x20   : > { %p2518_p13 = por %p75_p10, %p48_p2  ;;  %p2524_p0 = por %p81_p11, %p2491_p7 }
  0x21   : > { %2988 = sst [smem:[#allocation18_spill]] %s2514_s8  ;;  %s94_s28 = sadd.s32 1, %s2336_s11 }
  0x22   : > { %p104_p1 = scmp.ne.s32.totalorder %s2336_s11, %s2332_s10  ;;  %p105_p4 = scmp.eq.s32.totalorder %s1370_s23, 5 }
  0x23   : > { %s2532_s6 = scalar_select %p92_p12, %s2336_s11, %s94_s28  }
  0x24   : > { %p110_p5 = scmp.ne.s32.totalorder %s2332_s10, %s2328_s9  ;;  %p111_p2 = scmp.eq.s32.totalorder %s1371_s24, 5 }
  0x25   : > { %2991 = sst [smem:[#allocation19_spill]] %s2532_s6  ;;  %p2540_p6 = por %p105_p4, %p104_p1 }
  0x26   : > { %p2052_p7 = scmp.lt.s32.totalorder %s2380_s22, 6  ;;  %p2545_p9 = por %p111_p2, %p110_p5 }
  0x27   : > { %s131_s5 = sand.u32 1, %s2360_s17   ;;  %s1904_s7 = sshll.u32 %s2372_s20, 4 }
  0x28   : > { %s2993_s30 = scalar_select %p2545_p9, 1, 0 }
  0x29   : > { %s1374_s23 = sshll.u32 %s131_s5, 4  ;;  %s2995_s0 = sld [smem:[#allocation21_spill]] }
  0x2a   : > { %2994 = sst [smem:[#allocation20_spill]] %s2993_s30  ;;  %s135_s25 = scalar_lea.vmem [#allocation2], %s1374_s23 }
  0x2b   : > { %s144_s3 = sshll.u32 %s135_s25, 4  ;;  %p2042_p10 = pnand %p2052_p7, %p2484_p3  ;;  %s145_s3 = int_to_ptr.vmem [resolvable:$true] %s144_s3 }
  0x2c   : > { %s1905_s6 = sshll.u32 %s2372_s20, 9  ;;  %p2563_p11 = pnand %p2052_p7, %p2518_p13 }
  0x2d   : > { %p1382_p12 = scmp.ge.s32.totalorder %s2380_s22, 1  ;;  %s132_s11 = scalar_lea.sflag [#allocation3], %s131_s5 }
  0x2e   : > { %p174_p1 = scmp.lt.s32.totalorder %s2380_s22, 7  ;;  %s151_s26 = sand.u32 1, %s2348_s14  }
  0x2f   : > { %s140_s24 = scalar_lea.hbm %s2995_s0, %s1904_s7  ;;  %s1379_s25 = sshll.u32 %s2376_s21, 1 }
  0x30   : > { %s142_s8 = sshll.u32 %s140_s24, 4  ;;  %p2571_p4 = pnand %p1382_p12, %p174_p1  ;;  %s143_s8 = int_to_ptr.hbm [resolvable:$true] %s142_s8 }
  0x31   : > { %2044 = dma.hbm_to_vmem [thread:$0]  (!%p2042_p10), %s143_s8, 256, %s145_s3, %s132_s11  }
  0x32   : > { %s1377_s29 = sshll.u32 %s151_s26, 10  ;;  %s161_s7 = sadd.s32 %s1905_s6, %s1379_s25 }
  0x33   : > { %s1381_s28 = sshll.u32 %s161_s7, 2  ;;  %s155_s20 = scalar_lea.vmem [#allocation5], %s1377_s29 }
  0x34   : > { %s163_s0 = scalar_lea.hbm %s2968_s1, %s1381_s28  ;;  %s166_s30 = sshll.u32 %s155_s20, 4  ;;  %s167_s30 = int_to_ptr.vmem [resolvable:$true] %s166_s30 }
  0x35   : > { %s164_s9 = sshll.u32 %s163_s0, 4  ;;  %s152_s11 = scalar_lea.sflag [#allocation6], %s151_s26  ;;  %s165_s9 = int_to_ptr.hbm [resolvable:$true] %s164_s9 }
  0x36   : > { %s2382_s3 = smov 256   ;;  %s2383_s8 = smov 128  }
  0x37   : > { %s2384_s5 = smov 8   ;;  %178 = sbr.rel (%p2571_p4) target bundleno = 350 (0x15e), region = 28 }
  0x38   : > { %2047 = dma.hbm_to_vmem [thread:$0]  (!%p2563_p11), %s165_s9, 16384, %s167_s30, %s152_s11, %s2382_s3, %s2383_s8, %s2384_s5  }
  0x39   : > { %s180_s6 = sand.u32 (!%p2571_p4), 1, %s2356_s16  }
  0x3a   : > { %s2583_s25 = sshll.u32 (!%p2571_p4), %s180_s6, 4  ;;  %s181_s29 = scalar_lea.sflag (!%p2571_p4), [#allocation3], %s180_s6 }
  0x3b   : > { %s184_s20 = scalar_lea.vmem (!%p2571_p4), [#allocation2], %s2583_s25 }
  0x3c   : > { %2315 = dma.done.wait (%p2502_p8), %s181_s29, 256  }
  0x3d   : > { %2317 = vsyncadd (%p2502_p8), %s181_s29, 4294967040  ;;  %s190_s0 = sand.u32 1, %s2344_s13  }
  0x3e   : > { %s1384_s9 = sshll.u32 %s190_s0, 10  ;;  %s191_s17 = scalar_lea.sflag [#allocation6], %s190_s0 }
  0x3f   : > { %s2591_s30 = scalar_lea.vmem [#allocation5], %s1384_s9 }
  0x40   : > { %2319 = dma.done.wait (%p2524_p0), %s191_s17, 16384  }
  0x41   : > { %2321 = vsyncadd (%p2524_p0), %s191_s17, 4294950912  ;;  %s218_s26 = sand.u32 1, %s2332_s10   ;;  %p1386_p3 = scmp.ne.s32.totalorder %s2364_s18, 0 }
  0x42   : > { %s1385_s23 = sshll.u32 %s218_s26, 2 }
  0x43   : > { %s2600_s7 = scalar_lea.vmem [#allocation7], %s1385_s23  ;;  %228 = sbr.rel (%p1386_p3) target bundleno = 74 (0x4a), region = 40 }
  0x48   : > { %v2385_v0 = vmov 0.0  }
  0x49   : > { %229 = vst [vmem:[%s2600_s7] sm:$0xf] %v2385_v0 }
  0x4a PF: > { %v1445_v1 = vld [vmem:[%s2591_s30 + $0x70] sm:$0xf]  ;;  %v1921_v2 = vld [vmem:[%s2591_s30 + $0x74] sm:$0xf0]  ;;  %v1437_v12 = vld [vmem:[%s2591_s30 + $0x60] sm:$0xf] }
  0x4b   : > { %v1509_v3 = vld [vmem:[%s2591_s30 + $0xf0] sm:$0xf]  ;;  %v1446_v4 = vor.u32 %v1921_v2, %v1445_v1  ;;  %v1937_v5 = vld [vmem:[%s2591_s30 + $0xf4] sm:$0xf0]  ;;  %v1919_v14 = vld [vmem:[%s2591_s30 + $0x64] sm:$0xf0] }
  0x4c   : > { %v1573_v6 = vld [vmem:[%s2591_s30 + $0x170] sm:$0xf]  ;;  %v1953_v7 = vld [vmem:[%s2591_s30 + $0x174] sm:$0xf0]  ;;  %v1510_v8 = vor.u32 %v1937_v5, %v1509_v3  ;;  %v1501_v15 = vld [vmem:[%s2591_s30 + $0xe0] sm:$0xf]  ;;  %v1438_v17 = vor.u32 %v1919_v14, %v1437_v12 }
  0x4d   : > { %v1574_v9 = vor.u32 %v1953_v7, %v1573_v6  ;;  %v1637_v10 = vld [vmem:[%s2591_s30 + $0x1f0] sm:$0xf]  ;;  %v1969_v11 = vld [vmem:[%s2591_s30 + $0x1f4] sm:$0xf0]  ;;  %1030 = vmatpush.bf16.msra.mxu0 %v1446_v4  ;;  %v1935_v16 = vld [vmem:[%s2591_s30 + $0xe4] sm:$0xf0] }
  0x4e   : > { %v1638_v13 = vor.u32 %v1969_v11, %v1637_v10  ;;  %1043 = vmatpush.bf16.msra.mxu1 %v1510_v8  ;;  %v1502_v18 = vor.u32 %v1935_v16, %v1501_v15  ;;  %v1565_v19 = vld [vmem:[%s2591_s30 + $0x160] sm:$0xf]  ;;  %v1951_v20 = vld [vmem:[%s2591_s30 + $0x164] sm:$0xf0]  ;;  %v1429_v24 = vld [vmem:[%s2591_s30 + $0x50] sm:$0xf] }
  0x4f   : > { %1056 = vmatpush.bf16.msra.mxu2 %v1574_v9  ;;  %v1629_v21 = vld [vmem:[%s2591_s30 + $0x1e0] sm:$0xf]  ;;  %v1566_v22 = vor.u32 %v1951_v20, %v1565_v19  ;;  %v1967_v23 = vld [vmem:[%s2591_s30 + $0x1e4] sm:$0xf0]  ;;  %v1917_v25 = vld [vmem:[%s2591_s30 + $0x54] sm:$0xf0] }
  0x50   : > { %1069 = vmatpush.bf16.msra.mxu3 %v1638_v13  ;;  %v1630_v26 = vor.u32 %v1967_v23, %v1629_v21  ;;  %v1493_v27 = vld [vmem:[%s2591_s30 + $0xd0] sm:$0xf]  ;;  %v1933_v28 = vld [vmem:[%s2591_s30 + $0xd4] sm:$0xf0]  ;;  %v1430_v30 = vor.u32 %v1917_v25, %v1429_v24  ;;  %v1421_v36 = vld [vmem:[%s2591_s30 + $0x40] sm:$0xf] }
  0x51   : > { %v1557_v29 = vld [vmem:[%s2591_s30 + $0x150] sm:$0xf]  ;;  %1031 = vmatpush.bf16.msra.mxu0 %v1438_v17  ;;  %v1949_v31 = vld [vmem:[%s2591_s30 + $0x154] sm:$0xf0]  ;;  %v1494_v34 = vor.u32 %v1933_v28, %v1493_v27  ;;  %v1915_v37 = vld [vmem:[%s2591_s30 + $0x44] sm:$0xf0] }
  0x52   : > { %v1621_v32 = vld [vmem:[%s2591_s30 + $0x1d0] sm:$0xf]  ;;  %v1965_v33 = vld [vmem:[%s2591_s30 + $0x1d4] sm:$0xf0]  ;;  %1044 = vmatpush.bf16.msra.mxu1 %v1502_v18  ;;  %v1558_v35 = vor.u32 %v1949_v31, %v1557_v29  ;;  %v1485_v38 = vld [vmem:[%s2591_s30 + $0xc0] sm:$0xf]  ;;  %v1422_v45 = vor.u32 %v1915_v37, %v1421_v36 }
  0x53   : > { %1057 = vmatpush.bf16.msra.mxu2 %v1566_v22  ;;  %v1622_v39 = vor.u32 %v1965_v33, %v1621_v32  ;;  %v1931_v40 = vld [vmem:[%s2591_s30 + $0xc4] sm:$0xf0]  ;;  %v1549_v41 = vld [vmem:[%s2591_s30 + $0x140] sm:$0xf]  ;;  %v1413_v48 = vld [vmem:[%s2591_s30 + $0x30] sm:$0xf] }
  0x54   : > { %1070 = vmatpush.bf16.msra.mxu3 %v1630_v26  ;;  %v1947_v42 = vld [vmem:[%s2591_s30 + $0x144] sm:$0xf0]  ;;  %v1613_v43 = vld [vmem:[%s2591_s30 + $0x1c0] sm:$0xf]  ;;  %v1486_v46 = vor.u32 %v1931_v40, %v1485_v38  ;;  %v1913_v49 = vld [vmem:[%s2591_s30 + $0x34] sm:$0xf0] }
  0x55   : > { %v1963_v44 = vld [vmem:[%s2591_s30 + $0x1c4] sm:$0xf0]  ;;  %1032 = vmatpush.bf16.msra.mxu0 %v1430_v30  ;;  %v1550_v47 = vor.u32 %v1947_v42, %v1549_v41  ;;  %v1477_v50 = vld [vmem:[%s2591_s30 + $0xb0] sm:$0xf]  ;;  %v1929_v52 = vld [vmem:[%s2591_s30 + $0xb4] sm:$0xf0]  ;;  %v1414_v57 = vor.u32 %v1913_v49, %v1413_v48 }
  0x56   : > { %1045 = vmatpush.bf16.msra.mxu1 %v1494_v34  ;;  %v1614_v51 = vor.u32 %v1963_v44, %v1613_v43  ;;  %v1541_v53 = vld [vmem:[%s2591_s30 + $0x130] sm:$0xf]  ;;  %v1945_v54 = vld [vmem:[%s2591_s30 + $0x134] sm:$0xf0]  ;;  %v1478_v58 = vor.u32 %v1929_v52, %v1477_v50  ;;  %v1405_v60 = vld [vmem:[%s2591_s30 + $0x20] sm:$0xf] }
  0x57   : > { %1058 = vmatpush.bf16.msra.mxu2 %v1558_v35  ;;  %v1605_v55 = vld [vmem:[%s2591_s30 + $0x1b0] sm:$0xf]  ;;  %v1961_v56 = vld [vmem:[%s2591_s30 + $0x1b4] sm:$0xf0]  ;;  %v1542_v59 = vor.u32 %v1945_v54, %v1541_v53  ;;  %v1911_v61 = vld [vmem:[%s2591_s30 + $0x24] sm:$0xf0] }
  0x58   : > { %1071 = vmatpush.bf16.msra.mxu3 %v1622_v39  ;;  %v1469_v62 = vld [vmem:[%s2591_s30 + $0xa0] sm:$0xf]  ;;  %v1606_v63 = vor.u32 %v1961_v56, %v1605_v55  ;;  %v1927_v0 = vld [vmem:[%s2591_s30 + $0xa4] sm:$0xf0]  ;;  %v1406_v5 = vor.u32 %v1911_v61, %v1405_v60  ;;  %v1397_v8 = vld [vmem:[%s2591_s30 + $0x10] sm:$0xf] }
  0x59   : > { %1033 = vmatpush.bf16.msra.mxu0 %v1422_v45  ;;  %v1533_v1 = vld [vmem:[%s2591_s30 + $0x120] sm:$0xf]  ;;  %v1943_v2 = vld [vmem:[%s2591_s30 + $0x124] sm:$0xf0]  ;;  %v1470_v6 = vor.u32 %v1927_v0, %v1469_v62  ;;  %v1909_v9 = vld [vmem:[%s2591_s30 + $0x14] sm:$0xf0] }
  0x5a   : > { %1046 = vmatpush.bf16.msra.mxu1 %v1486_v46  ;;  %v1597_v3 = vld [vmem:[%s2591_s30 + $0x1a0] sm:$0xf]  ;;  %v1959_v4 = vld [vmem:[%s2591_s30 + $0x1a4] sm:$0xf0]  ;;  %v1534_v7 = vor.u32 %v1943_v2, %v1533_v1  ;;  %v1461_v10 = vld [vmem:[%s2591_s30 + $0x90] sm:$0xf]  ;;  %v1398_v17 = vor.u32 %v1909_v9, %v1397_v8 }
  0x5b   : > { %1059 = vmatpush.bf16.msra.mxu2 %v1550_v47  ;;  %v1598_v11 = vor.u32 %v1959_v4, %v1597_v3  ;;  %v1925_v12 = vld [vmem:[%s2591_s30 + $0x94] sm:$0xf0]  ;;  %v1525_v13 = vld [vmem:[%s2591_s30 + $0x110] sm:$0xf]  ;;  %v1389_v18 = vld [vmem:[%s2591_s30] sm:$0xf] }
  0x5c   : > { %1072 = vmatpush.bf16.msra.mxu3 %v1614_v51  ;;  %v1941_v14 = vld [vmem:[%s2591_s30 + $0x114] sm:$0xf0]  ;;  %v1589_v15 = vld [vmem:[%s2591_s30 + $0x190] sm:$0xf]  ;;  %v1907_v19 = vld [vmem:[%s2591_s30 + $0x4] sm:$0xf0]  ;;  %v1462_v20 = vor.u32 %v1925_v12, %v1461_v10 }
  0x5d   : > { %1034 = vmatpush.bf16.msra.mxu0 %v1414_v57  ;;  %v1957_v16 = vld [vmem:[%s2591_s30 + $0x194] sm:$0xf0]  ;;  %v1526_v21 = vor.u32 %v1941_v14, %v1525_v13  ;;  %v1453_v22 = vld [vmem:[%s2591_s30 + $0x80] sm:$0xf]  ;;  %v1923_v23 = vld [vmem:[%s2591_s30 + $0x84] sm:$0xf0]  ;;  %v1390_v32 = vor.u32 %v1907_v19, %v1389_v18 }
  0x5e   : > { %1047 = vmatpush.bf16.msra.mxu1 %v1478_v58  ;;  %v1517_v24 = vld [vmem:[%s2591_s30 + $0x100] sm:$0xf]  ;;  %v1590_v25 = vor.u32 %v1957_v16, %v1589_v15  ;;  %v1939_v26 = vld [vmem:[%s2591_s30 + $0x104] sm:$0xf0]  ;;  %v1701_v29 = vld [vmem:[%s2591_s30 + $0x270] sm:$0xf]  ;;  %v1454_v36 = vor.u32 %v1923_v23, %v1453_v22 }
  0x5f   : > { %1060 = vmatpush.bf16.msra.mxu2 %v1542_v59  ;;  %v1581_v27 = vld [vmem:[%s2591_s30 + $0x180] sm:$0xf]  ;;  %v1955_v28 = vld [vmem:[%s2591_s30 + $0x184] sm:$0xf0]  ;;  %v1985_v30 = vld [vmem:[%s2591_s30 + $0x274] sm:$0xf0]  ;;  %v1518_v37 = vor.u32 %v1939_v26, %v1517_v24 }
  0x60   : > { %1073 = vmatpush.bf16.msra.mxu3 %v1606_v63  ;;  %v1765_v31 = vld [vmem:[%s2591_s30 + $0x2f0] sm:$0xf]  ;;  %v2001_v33 = vld [vmem:[%s2591_s30 + $0x2f4] sm:$0xf0]  ;;  %v1582_v40 = vor.u32 %v1955_v28, %v1581_v27  ;;  %v1702_v41 = vor.u32 %v1985_v30, %v1701_v29  ;;  %v1693_v44 = vld [vmem:[%s2591_s30 + $0x260] sm:$0xf] }
  0x61   : > { %1035 = vmatpush.bf16.msra.mxu0 %v1406_v5  ;;  %v1829_v34 = vld [vmem:[%s2591_s30 + $0x370] sm:$0xf]  ;;  %v2017_v35 = vld [vmem:[%s2591_s30 + $0x374] sm:$0xf0]  ;;  %v1766_v42 = vor.u32 %v2001_v33, %v1765_v31  ;;  %v1983_v45 = vld [vmem:[%s2591_s30 + $0x264] sm:$0xf0] }
  0x62   : > { %1048 = vmatpush.bf16.msra.mxu1 %v1470_v6  ;;  %v1893_v38 = vld [vmem:[%s2591_s30 + $0x3f0] sm:$0xf]  ;;  %v2033_v39 = vld [vmem:[%s2591_s30 + $0x3f4] sm:$0xf0]  ;;  %v1830_v43 = vor.u32 %v2017_v35, %v1829_v34  ;;  %v1757_v46 = vld [vmem:[%s2591_s30 + $0x2e0] sm:$0xf]  ;;  %v1694_v53 = vor.u32 %v1983_v45, %v1693_v44 }
  0x63   : > { %1061 = vmatpush.bf16.msra.mxu2 %v1534_v7  ;;  %v1894_v47 = vor.u32 %v2033_v39, %v1893_v38  ;;  %v1999_v48 = vld [vmem:[%s2591_s30 + $0x2e4] sm:$0xf0]  ;;  %v1821_v49 = vld [vmem:[%s2591_s30 + $0x360] sm:$0xf]  ;;  %v1685_v54 = vld [vmem:[%s2591_s30 + $0x250] sm:$0xf] }
  0x64   : > { %1074 = vmatpush.bf16.msra.mxu3 %v1598_v11  ;;  %v2015_v50 = vld [vmem:[%s2591_s30 + $0x364] sm:$0xf0]  ;;  %v1885_v51 = vld [vmem:[%s2591_s30 + $0x3e0] sm:$0xf]  ;;  %v1981_v55 = vld [vmem:[%s2591_s30 + $0x254] sm:$0xf0]  ;;  %v1758_v56 = vor.u32 %v1999_v48, %v1757_v46 }
  0x65   : > { %1036 = vmatpush.bf16.msra.mxu0 %v1398_v17  ;;  %v2031_v52 = vld [vmem:[%s2591_s30 + $0x3e4] sm:$0xf0]  ;;  %v1822_v57 = vor.u32 %v2015_v50, %v1821_v49  ;;  %v1749_v58 = vld [vmem:[%s2591_s30 + $0x2d0] sm:$0xf]  ;;  %v1997_v59 = vld [vmem:[%s2591_s30 + $0x2d4] sm:$0xf0]  ;;  %v1686_v2 = vor.u32 %v1981_v55, %v1685_v54 }
  0x66   : > { %1049 = vmatpush.bf16.msra.mxu1 %v1462_v20  ;;  %v231_v60 = vld [vmem:[%s184_s20] sm:$0xff]  ;;  %v1886_v61 = vor.u32 %v2031_v52, %v1885_v51  ;;  %v2013_v63 = vld [vmem:[%s2591_s30 + $0x354] sm:$0xf0]  ;;  %v1750_v4 = vor.u32 %v1997_v59, %v1749_v58  ;;  %v1979_v6 = vld [vmem:[%s2591_s30 + $0x244] sm:$0xf0]  ;;  %s2034_s18 = sshll.u32 %s2368_s19, 2 }
  0x67   : > { %1062 = vmatpush.bf16.msra.mxu2 %v1526_v21  ;;  %v1813_v62 = vld [vmem:[%s2591_s30 + $0x350] sm:$0xf]  ;;  %235 = vst [vmem:[#allocation1] ss:$4 sm:$0xff] %v231_v60  ;;  %v2029_v1 = vld [vmem:[%s2591_s30 + $0x3d4] sm:$0xf0]  ;;  %s1258_s28 = scalar_lea.hbm %s2969_s2, %s2034_s18 }
  0x68   : > { %1075 = vmatpush.bf16.msra.mxu3 %v1590_v25  ;;  %v1877_v0 = vld [vmem:[%s2591_s30 + $0x3d0] sm:$0xf]  ;;  %v1677_v3 = vld [vmem:[%s2591_s30 + $0x240] sm:$0xf]  ;;  %v1814_v5 = vor.u32 %v2013_v63, %v1813_v62  ;;  %v1995_v8 = vld [vmem:[%s2591_s30 + $0x2c4] sm:$0xf0] }
  0x69   : > { %1037 = vmatpush.bf16.msra.mxu0 %v1390_v32  ;;  %v1741_v7 = vld [vmem:[%s2591_s30 + $0x2c0] sm:$0xf]  ;;  %v1878_v9 = vor.u32 %v2029_v1, %v1877_v0  ;;  %v2011_v11 = vld [vmem:[%s2591_s30 + $0x344] sm:$0xf0]  ;;  %v1669_v14 = vld [vmem:[%s2591_s30 + $0x230] sm:$0xf]  ;;  %v1678_v16 = vor.u32 %v1979_v6, %v1677_v3 }
  0x6a   : > { %1050 = vmatpush.bf16.msra.mxu1 %v1454_v36  ;;  %v1805_v10 = vld [vmem:[%s2591_s30 + $0x340] sm:$0xf]  ;;  %v2027_v13 = vld [vmem:[%s2591_s30 + $0x3c4] sm:$0xf0]  ;;  %v1977_v15 = vld [vmem:[%s2591_s30 + $0x234] sm:$0xf0]  ;;  %v1742_v21 = vor.u32 %v1995_v8, %v1741_v7 }
  0x6b   : > { %1063 = vmatpush.bf16.msra.mxu2 %v1518_v37  ;;  %v1869_v12 = vld [vmem:[%s2591_s30 + $0x3c0] sm:$0xf]  ;;  %v1733_v17 = vld [vmem:[%s2591_s30 + $0x2b0] sm:$0xf]  ;;  %v1993_v18 = vld [vmem:[%s2591_s30 + $0x2b4] sm:$0xf0]  ;;  %v1806_v22 = vor.u32 %v2011_v11, %v1805_v10  ;;  %v1670_v34 = vor.u32 %v1977_v15, %v1669_v14 }
  0x6c   : > { %1076 = vmatpush.bf16.msra.mxu3 %v1582_v40  ;;  %v1797_v19 = vld [vmem:[%s2591_s30 + $0x330] sm:$0xf]  ;;  %v2009_v20 = vld [vmem:[%s2591_s30 + $0x334] sm:$0xf0]  ;;  %v1870_v25 = vor.u32 %v2027_v13, %v1869_v12  ;;  %v1734_v35 = vor.u32 %v1993_v18, %v1733_v17  ;;  %v1661_v37 = vld [vmem:[%s2591_s30 + $0x220] sm:$0xf] }
  0x6d   : > { %1082 = vmatpush.bf16.msrb.mxu0 %v1702_v41  ;;  %v1861_v30 = vld [vmem:[%s2591_s30 + $0x3b0] sm:$0xf]  ;;  %v2025_v31 = vld [vmem:[%s2591_s30 + $0x3b4] sm:$0xf0]  ;;  %v1798_v36 = vor.u32 %v2009_v20, %v1797_v19  ;;  %v1975_v38 = vld [vmem:[%s2591_s30 + $0x224] sm:$0xf0] }
  0x6e   : > { %1095 = vmatpush.bf16.msrb.mxu1 %v1766_v42  ;;  %v240_v23 = vld.sshfl [vmem:[#allocation1 + $0x10] sm:$0xff pattern:$0x73625140]  ;;  %v238_v24 = vld.sshfl [vmem:[#allocation1] sm:$0xff pattern:$0x73625140]  ;;  %v1862_v40 = vor.u32 %v2025_v31, %v1861_v30  ;;  %v1662_v46 = vor.u32 %v1975_v38, %v1661_v37 }
  0x6f   : > { %1108 = vmatpush.bf16.msrb.mxu2 %v1830_v43  ;;  %v2708_v26 = vpack.c.bf16 %v240_v23, %v240_v23  ;;  %v2710_v27 = vpack.c.bf16 %v238_v24, %v238_v24  ;;  %v241_v28 = vld.sshfl [vmem:[#allocation1 + $0x18] sm:$0xff pattern:$0x73625140]  ;;  %v239_v29 = vld.sshfl [vmem:[#allocation1 + $0x8] sm:$0xff pattern:$0x73625140] }
  0x70   : > { %1121 = vmatpush.bf16.msrb.mxu3 %v1894_v47  ;;  %v2714_v32 = vpack.c.bf16 %v241_v28, %v241_v28  ;;  %v2716_v33 = vpack.c.bf16 %v239_v29, %v239_v29  ;;  %v1725_v39 = vld [vmem:[%s2591_s30 + $0x2a0] sm:$0xf]  ;;  %v1991_v41 = vld [vmem:[%s2591_s30 + $0x2a4] sm:$0xf0]  ;;  %v1653_v47 = vld [vmem:[%s2591_s30 + $0x210] sm:$0xf] }
  0x71   : > { %1083 = vmatpush.bf16.msrb.mxu0 %v1694_v53  ;;  %1064 = vmatmul.bf16.vlgmr.msra.gmra.mxu2 %v2708_v26  ;;  %v1789_v42 = vld [vmem:[%s2591_s30 + $0x320] sm:$0xf]  ;;  %v2007_v43 = vld [vmem:[%s2591_s30 + $0x324] sm:$0xf0]  ;;  %v1973_v48 = vld [vmem:[%s2591_s30 + $0x214] sm:$0xf0]  ;;  %v1726_v49 = vor.u32 %v1991_v41, %v1725_v39 }
  0x72   : > { %1096 = vmatpush.bf16.msrb.mxu1 %v1758_v56  ;;  %1038 = vmatmul.bf16.vlgmr.msra.gmra.mxu0 %v2710_v27  ;;  %v1853_v44 = vld [vmem:[%s2591_s30 + $0x3a0] sm:$0xf]  ;;  %v2023_v45 = vld [vmem:[%s2591_s30 + $0x3a4] sm:$0xf0]  ;;  %v1790_v50 = vor.u32 %v2007_v43, %v1789_v42  ;;  %v1717_v51 = vld [vmem:[%s2591_s30 + $0x290] sm:$0xf]  ;;  %v1654_v60 = vor.u32 %v1973_v48, %v1653_v47 }
  0x73   : > { %1109 = vmatpush.bf16.msrb.mxu2 %v1822_v57  ;;  %1077 = vmatmul.bf16.vlgmr.msra.gmra.mxu3 %v2714_v32  ;;  %v1989_v52 = vld [vmem:[%s2591_s30 + $0x294] sm:$0xf0]  ;;  %v1854_v54 = vor.u32 %v2023_v45, %v1853_v44  ;;  %v1781_v55 = vld [vmem:[%s2591_s30 + $0x310] sm:$0xf]  ;;  %v1645_v59 = vld [vmem:[%s2591_s30 + $0x200] sm:$0xf] }
  0x74   : > { %1122 = vmatpush.bf16.msrb.mxu3 %v1886_v61  ;;  %1051 = vmatmul.bf16.vlgmr.msra.gmra.mxu1 %v2716_v33  ;;  %v232_v53 = vld [vmem:[%s184_s20 + $0x8] sm:$0xff]  ;;  %v1845_v57 = vld [vmem:[%s2591_s30 + $0x390] sm:$0xf]  ;;  %v1709_v62 = vld [vmem:[%s2591_s30 + $0x280] sm:$0xf]  ;;  %v1718_v0 = vor.u32 %v1989_v52, %v1717_v51  ;;  %vm1241_vm0 = vcmask 1041408  }
  0x75   : > { %1084 = vmatpush.bf16.msrb.mxu0 %v1686_v2  ;;  %v2005_v56 = vld [vmem:[%s2591_s30 + $0x314] sm:$0xf0]  ;;  %237 = vst [vmem:[#allocation1 + $0x20] ss:$4 sm:$0xff] %v232_v53  ;;  %v1971_v61 = vld [vmem:[%s2591_s30 + $0x204] sm:$0xf0] }
  0x76   : > { %1097 = vmatpush.bf16.msrb.mxu1 %v1750_v4  ;;  %v2021_v58 = vld [vmem:[%s2591_s30 + $0x394] sm:$0xf0]  ;;  %v1987_v63 = vld [vmem:[%s2591_s30 + $0x284] sm:$0xf0]  ;;  %v1782_v1 = vor.u32 %v2005_v56, %v1781_v55  ;;  %v1773_v2 = vld [vmem:[%s2591_s30 + $0x300] sm:$0xf]  ;;  %v1646_v12 = vor.u32 %v1971_v61, %v1645_v59 }
  0x77   : > { %1110 = vmatpush.bf16.msrb.mxu2 %v1814_v5  ;;  %v2003_v3 = vld [vmem:[%s2591_s30 + $0x304] sm:$0xf0]  ;;  %v1837_v4 = vld [vmem:[%s2591_s30 + $0x380] sm:$0xf]  ;;  %v1846_v5 = vor.u32 %v2021_v58, %v1845_v57  ;;  %v1920_v7 = vld [vmem:[%s2591_s30 + $0x74] sm:$0xf] }
  0x78   : > { %1123 = vmatpush.bf16.msrb.mxu3 %v1878_v9  ;;  %v2019_v6 = vld [vmem:[%s2591_s30 + $0x384] sm:$0xf0]  ;;  %v1447_v8 = vld [vmem:[%s2591_s30 + $0x78] sm:$0xf0]  ;;  %v1936_v9 = vld [vmem:[%s2591_s30 + $0xf4] sm:$0xf]  ;;  %v1774_v17 = vor.u32 %v2003_v3, %v1773_v2 }
  0x79   : > { %1085 = vmatpush.bf16.msrb.mxu0 %v1678_v16  ;;  %v1511_v10 = vld [vmem:[%s2591_s30 + $0xf8] sm:$0xf0]  ;;  %v1952_v11 = vld [vmem:[%s2591_s30 + $0x174] sm:$0xf]  ;;  %v1710_v16 = vor.u32 %v1987_v63, %v1709_v62  ;;  %v1918_v18 = vld [vmem:[%s2591_s30 + $0x64] sm:$0xf] }
  0x7a   : > { %1098 = vmatpush.bf16.msrb.mxu1 %v1742_v21  ;;  %v1575_v13 = vld [vmem:[%s2591_s30 + $0x178] sm:$0xf0]  ;;  %v1968_v14 = vld [vmem:[%s2591_s30 + $0x1f4] sm:$0xf]  ;;  %v1439_v19 = vld [vmem:[%s2591_s30 + $0x68] sm:$0xf0]  ;;  %v1838_v21 = vor.u32 %v2019_v6, %v1837_v4 }
  0x7b   : > { %1111 = vmatpush.bf16.msrb.mxu2 %v1806_v22  ;;  %v1639_v15 = vld [vmem:[%s2591_s30 + $0x1f8] sm:$0xf0]  ;;  %v1450_v22 = vor.u32 %v1920_v7, %v1447_v8  ;;  %v1578_v28 = vor.u32 %v1952_v11, %v1575_v13  ;;  %v1934_v29 = vld [vmem:[%s2591_s30 + $0xe4] sm:$0xf]  ;;  %v1631_v39 = vld [vmem:[%s2591_s30 + $0x1e8] sm:$0xf0]  ;;  %v1442_v42 = vor.u32 %v1918_v18, %v1439_v19 }
  0x7c   : > { %1124 = vmatpush.bf16.msrb.mxu3 %v1870_v25  ;;  %v244_v20 = vld.sshfl [vmem:[#allocation1 + $0x30] sm:$0xff pattern:$0x73625140]  ;;  %v242_v23 = vld.sshfl [vmem:[#allocation1 + $0x20] sm:$0xff pattern:$0x73625140]  ;;  %v1514_v25 = vor.u32 %v1936_v9, %v1511_v10  ;;  %v1642_v31 = vor.u32 %v1968_v14, %v1639_v15 }
  0x7d   : > { %1086 = vmatpush.bf16.msrb.mxu0 %v1670_v34  ;;  %v245_v24 = vld.sshfl [vmem:[#allocation1 + $0x38] sm:$0xff pattern:$0x73625140]  ;;  %v243_v30 = vld.sshfl [vmem:[#allocation1 + $0x28] sm:$0xff pattern:$0x73625140]  ;;  %v2762_v37 = vpack.c.bf16 %v244_v20, %v244_v20 }
  0x7e   : > { %1099 = vmatpush.bf16.msrb.mxu1 %v1734_v35  ;;  %v1503_v34 = vld [vmem:[%s2591_s30 + $0xe8] sm:$0xf0]  ;;  %v1950_v35 = vld [vmem:[%s2591_s30 + $0x164] sm:$0xf]  ;;  %v2768_v41 = vpack.c.bf16 %v245_v24, %v245_v24  ;;  %v2770_v43 = vpack.c.bf16 %v243_v30, %v243_v30  ;;  %v1431_v47 = vld [vmem:[%s2591_s30 + $0x58] sm:$0xf0] }
  0x7f   : > { %1112 = vmatpush.bf16.msrb.mxu2 %v1798_v36  ;;  %v1567_v36 = vld [vmem:[%s2591_s30 + $0x168] sm:$0xf0]  ;;  %v1966_v38 = vld [vmem:[%s2591_s30 + $0x1e4] sm:$0xf]  ;;  %v1506_v44 = vor.u32 %v1934_v29, %v1503_v34  ;;  %v1932_v48 = vld [vmem:[%s2591_s30 + $0xd4] sm:$0xf] }
  0x80   : > { %1125 = vmatpush.bf16.msrb.mxu3 %v1862_v40  ;;  %v2766_v40 = vpack.c.bf16 %v242_v23, %v242_v23  ;;  %v1570_v45 = vor.u32 %v1950_v35, %v1567_v36  ;;  %v1948_v51 = vld [vmem:[%s2591_s30 + $0x154] sm:$0xf]  ;;  %v1559_v52 = vld [vmem:[%s2591_s30 + $0x158] sm:$0xf0]  ;;  %v1914_v58 = vld [vmem:[%s2591_s30 + $0x44] sm:$0xf] }
  0x81   : > { %1087 = vmatpush.bf16.msrb.mxu0 %v1662_v46  ;;  %v1916_v46 = vld [vmem:[%s2591_s30 + $0x54] sm:$0xf]  ;;  %v1562_v57 = vor.u32 %v1948_v51, %v1559_v52  ;;  %v1423_v59 = vld [vmem:[%s2591_s30 + $0x48] sm:$0xf0]  ;;  %v1946_v63 = vld [vmem:[%s2591_s30 + $0x144] sm:$0xf] }
  0x82   : > { %1100 = vmatpush.bf16.msrb.mxu1 %v1726_v49  ;;  %v1634_v49 = vor.u32 %v1966_v38, %v1631_v39  ;;  %v1964_v53 = vld [vmem:[%s2591_s30 + $0x1d4] sm:$0xf]  ;;  %v1434_v55 = vor.u32 %v1916_v46, %v1431_v47  ;;  %v1487_v62 = vld [vmem:[%s2591_s30 + $0xc8] sm:$0xf0]  ;;  %v1426_v3 = vor.u32 %v1914_v58, %v1423_v59  ;;  %v1415_v7 = vld [vmem:[%s2591_s30 + $0x38] sm:$0xf0] }
  0x83   : > { %1113 = vmatpush.bf16.msrb.mxu2 %v1790_v50  ;;  %v1495_v50 = vld [vmem:[%s2591_s30 + $0xd8] sm:$0xf0]  ;;  %v1615_v2 = vld [vmem:[%s2591_s30 + $0x1c8] sm:$0xf0]  ;;  %v1912_v6 = vld [vmem:[%s2591_s30 + $0x34] sm:$0xf] }
  0x84   : > { %1126 = vmatpush.bf16.msrb.mxu3 %v1854_v54  ;;  %v1623_v54 = vld [vmem:[%s2591_s30 + $0x1d8] sm:$0xf0]  ;;  %v1498_v56 = vor.u32 %v1932_v48, %v1495_v50  ;;  %v1928_v8 = vld [vmem:[%s2591_s30 + $0xb4] sm:$0xf]  ;;  %v1418_v15 = vor.u32 %v1912_v6, %v1415_v7  ;;  %v1910_v18 = vld [vmem:[%s2591_s30 + $0x24] sm:$0xf] }
  0x85   : > { %1088 = vmatpush.bf16.msrb.mxu0 %v1654_v60  ;;  %v1930_v60 = vld [vmem:[%s2591_s30 + $0xc4] sm:$0xf]  ;;  %v1626_v61 = vor.u32 %v1964_v53, %v1623_v54  ;;  %v1479_v10 = vld [vmem:[%s2591_s30 + $0xb8] sm:$0xf0]  ;;  %v1944_v11 = vld [vmem:[%s2591_s30 + $0x134] sm:$0xf] }
  0x86   : > { %1101 = vmatpush.bf16.msrb.mxu1 %v1718_v0  ;;  %v1551_v0 = vld [vmem:[%s2591_s30 + $0x148] sm:$0xf0]  ;;  %v1490_v4 = vor.u32 %v1930_v60, %v1487_v62  ;;  %v1960_v13 = vld [vmem:[%s2591_s30 + $0x1b4] sm:$0xf]  ;;  %v1607_v14 = vld [vmem:[%s2591_s30 + $0x1b8] sm:$0xf0] }
  0x87   : > { %1114 = vmatpush.bf16.msrb.mxu2 %v1782_v1  ;;  %v1962_v1 = vld [vmem:[%s2591_s30 + $0x1c4] sm:$0xf]  ;;  %v1407_v19 = vld [vmem:[%s2591_s30 + $0x28] sm:$0xf0]  ;;  %v1908_v34 = vld [vmem:[%s2591_s30 + $0x14] sm:$0xf] }
  0x88   : > { %1127 = vmatpush.bf16.msrb.mxu3 %v1846_v5  ;;  %v1554_v5 = vor.u32 %v1946_v63, %v1551_v0  ;;  %v1618_v9 = vor.u32 %v1962_v1, %v1615_v2  ;;  %v1926_v20 = vld [vmem:[%s2591_s30 + $0xa4] sm:$0xf]  ;;  %v1535_v24 = vld [vmem:[%s2591_s30 + $0x128] sm:$0xf0]  ;;  %v1410_v29 = vor.u32 %v1910_v18, %v1407_v19  ;;  %v1399_v35 = vld [vmem:[%s2591_s30 + $0x18] sm:$0xf0] }
  0x89   : > { %1089 = vmatpush.bf16.msrb.mxu0 %v1646_v12  ;;  %v1543_v12 = vld [vmem:[%s2591_s30 + $0x138] sm:$0xf0]  ;;  %v1942_v23 = vld [vmem:[%s2591_s30 + $0x124] sm:$0xf]  ;;  %v1924_v36 = vld [vmem:[%s2591_s30 + $0x94] sm:$0xf]  ;;  %v1402_v47 = vor.u32 %v1908_v34, %v1399_v35 }
  0x8a   : > { %1102 = vmatpush.bf16.msrb.mxu1 %v1710_v16  ;;  %v1482_v16 = vor.u32 %v1928_v8, %v1479_v10  ;;  %v1463_v39 = vld [vmem:[%s2591_s30 + $0x98] sm:$0xf0]  ;;  %v1906_v48 = vld [vmem:[%s2591_s30 + $0x4] sm:$0xf]  ;;  %v1455_v53 = vld [vmem:[%s2591_s30 + $0x88] sm:$0xf0] }
  0x8b   : > { %1115 = vmatpush.bf16.msrb.mxu2 %v1774_v17  ;;  %v1546_v17 = vor.u32 %v1944_v11, %v1543_v12  ;;  %v1591_v46 = vld [vmem:[%s2591_s30 + $0x198] sm:$0xf0]  ;;  %v1466_v50 = vor.u32 %v1924_v36, %v1463_v39  ;;  %v1922_v52 = vld [vmem:[%s2591_s30 + $0x84] sm:$0xf]  ;;  %v1583_v58 = vld [vmem:[%s2591_s30 + $0x188] sm:$0xf0] }
  0x8c   : > { %1128 = vmatpush.bf16.msrb.mxu3 %v1838_v21  ;;  %1090 = vmatmul.bf16.vlgmr.msrb.gmra.mxu0 %v2766_v40  ;;  %v1610_v21 = vor.u32 %v1960_v13, %v1607_v14  ;;  %v1938_v54 = vld [vmem:[%s2591_s30 + $0x104] sm:$0xf]  ;;  %v1984_v59 = vld [vmem:[%s2591_s30 + $0x274] sm:$0xf]  ;;  %v1703_v60 = vld [vmem:[%s2591_s30 + $0x278] sm:$0xf0]  ;;  %v1458_v2 = vor.u32 %v1922_v52, %v1455_v53 }
  0x8d   : > { %1134 = vmatpush.bf16.msra.mxu0 %v1450_v22  ;;  %1103 = vmatmul.bf16.vlgmr.msrb.gmra.mxu1 %v2770_v43  ;;  %v1471_v22 = vld [vmem:[%s2591_s30 + $0xa8] sm:$0xf0]  ;;  %v1767_v63 = vld [vmem:[%s2591_s30 + $0x2f8] sm:$0xf0]  ;;  %v2016_v0 = vld [vmem:[%s2591_s30 + $0x374] sm:$0xf]  ;;  %v1706_v7 = vor.u32 %v1984_v59, %v1703_v60 }
  0x8e   : > { %1147 = vmatpush.bf16.msra.mxu1 %v1514_v25  ;;  %1116 = vmatmul.bf16.vlgmr.msrb.gmra.mxu2 %v2762_v37  ;;  %v1958_v25 = vld [vmem:[%s2591_s30 + $0x1a4] sm:$0xf]  ;;  %v1474_v30 = vor.u32 %v1926_v20, %v1471_v22  ;;  %v1831_v1 = vld [vmem:[%s2591_s30 + $0x378] sm:$0xf0]  ;;  %v1695_v11 = vld [vmem:[%s2591_s30 + $0x268] sm:$0xf0] }
  0x8f   : > { %1160 = vmatpush.bf16.msra.mxu2 %v1578_v28  ;;  %1129 = vmatmul.bf16.vlgmr.msrb.gmra.mxu3 %v2768_v41  ;;  %v1599_v28 = vld [vmem:[%s2591_s30 + $0x1a8] sm:$0xf0]  ;;  %v1982_v10 = vld [vmem:[%s2591_s30 + $0x264] sm:$0xf]  ;;  %v1980_v22 = vld [vmem:[%s2591_s30 + $0x254] sm:$0xf] }
  0x90   : > { %1173 = vmatpush.bf16.msra.mxu3 %v1642_v31  ;;  %v1538_v31 = vor.u32 %v1942_v23, %v1535_v24  ;;  %v1602_v38 = vor.u32 %v1958_v25, %v1599_v28  ;;  %v1998_v12 = vld [vmem:[%s2591_s30 + $0x2e4] sm:$0xf]  ;;  %v1759_v14 = vld [vmem:[%s2591_s30 + $0x2e8] sm:$0xf0]  ;;  %v1698_v19 = vor.u32 %v1982_v10, %v1695_v11  ;;  %v1687_v23 = vld [vmem:[%s2591_s30 + $0x258] sm:$0xf0] }
  0x91   : > { %1135 = vmatpush.bf16.msra.mxu0 %v1442_v42  ;;  %v1940_v42 = vld [vmem:[%s2591_s30 + $0x114] sm:$0xf]  ;;  %v1887_v18 = vld [vmem:[%s2591_s30 + $0x3e8] sm:$0xf0]  ;;  %v1762_v20 = vor.u32 %v1998_v12, %v1759_v14  ;;  %v1751_v28 = vld [vmem:[%s2591_s30 + $0x2d8] sm:$0xf0]  ;;  %v1690_v35 = vor.u32 %v1980_v22, %v1687_v23 }
  0x92   : > { %1148 = vmatpush.bf16.msra.mxu1 %v1506_v44  ;;  %v1527_v44 = vld [vmem:[%s2591_s30 + $0x118] sm:$0xf0]  ;;  %v1996_v24 = vld [vmem:[%s2591_s30 + $0x2d4] sm:$0xf]  ;;  %v1679_v39 = vld [vmem:[%s2591_s30 + $0x248] sm:$0xf0] }
  0x93   : > { %1161 = vmatpush.bf16.msra.mxu2 %v1570_v45  ;;  %v1956_v45 = vld [vmem:[%s2591_s30 + $0x194] sm:$0xf]  ;;  %v1530_v51 = vor.u32 %v1940_v42, %v1527_v44  ;;  %v1879_v34 = vld [vmem:[%s2591_s30 + $0x3d8] sm:$0xf0]  ;;  %v1994_v42 = vld [vmem:[%s2591_s30 + $0x2c4] sm:$0xf] }
  0x94   : > { %1174 = vmatpush.bf16.msra.mxu3 %v1634_v49  ;;  %v1391_v49 = vld [vmem:[%s2591_s30 + $0x8] sm:$0xf0]  ;;  %v1992_v52 = vld [vmem:[%s2591_s30 + $0x2b4] sm:$0xf]  ;;  %v1655_v11 = vld [vmem:[%s2591_s30 + $0x218] sm:$0xf0] }
  0x95   : > { %1136 = vmatpush.bf16.msra.mxu0 %v1434_v55  ;;  %v1594_v55 = vor.u32 %v1956_v45, %v1591_v46  ;;  %v1394_v62 = vor.u32 %v1906_v48, %v1391_v49  ;;  %v1743_v44 = vld [vmem:[%s2591_s30 + $0x2c8] sm:$0xf0]  ;;  %v2026_v46 = vld [vmem:[%s2591_s30 + $0x3c4] sm:$0xf]  ;;  %v1972_v10 = vld [vmem:[%s2591_s30 + $0x214] sm:$0xf] }
  0x96   : > { %1149 = vmatpush.bf16.msra.mxu1 %v1498_v56  ;;  %v1519_v56 = vld [vmem:[%s2591_s30 + $0x108] sm:$0xf0]  ;;  %v1746_v48 = vor.u32 %v1994_v42, %v1743_v44  ;;  %v1988_v12 = vld [vmem:[%s2591_s30 + $0x294] sm:$0xf]  ;;  %v1719_v14 = vld [vmem:[%s2591_s30 + $0x298] sm:$0xf0] }
  0x97   : > { %1162 = vmatpush.bf16.msra.mxu2 %v1562_v57  ;;  %v1954_v57 = vld [vmem:[%s2591_s30 + $0x184] sm:$0xf]  ;;  %v1807_v45 = vld [vmem:[%s2591_s30 + $0x348] sm:$0xf0]  ;;  %s1260_s15 = sshll.u32 %s2600_s7, 4  ;;  %s1262_s19 = sshll.u32 %s1258_s28, 4  ;;  %s1261_s15 = int_to_ptr.vmem [resolvable:$true] %s1260_s15  ;;  %s1263_s19 = int_to_ptr.hbm [resolvable:$true] %s1262_s19 }
  0x98   : > { %1175 = vmatpush.bf16.msra.mxu3 %v1626_v61  ;;  %v2000_v61 = vld [vmem:[%s2591_s30 + $0x2f4] sm:$0xf]  ;;  %v1586_v6 = vor.u32 %v1954_v57, %v1583_v58  ;;  %v1863_v58 = vld [vmem:[%s2591_s30 + $0x3b8] sm:$0xf0]  ;;  %v1970_v22 = vld [vmem:[%s2591_s30 + $0x204] sm:$0xf] }
  0x99   : > { %1137 = vmatpush.bf16.msra.mxu0 %v1426_v3  ;;  %v1522_v3 = vor.u32 %v1938_v54, %v1519_v56  ;;  %v1770_v8 = vor.u32 %v2000_v61, %v1767_v63  ;;  %v1735_v54 = vld [vmem:[%s2591_s30 + $0x2b8] sm:$0xf0]  ;;  %v2024_v57 = vld [vmem:[%s2591_s30 + $0x3b4] sm:$0xf]  ;;  %v1663_v63 = vld [vmem:[%s2591_s30 + $0x228] sm:$0xf0] }
  0x9a   : > { %1150 = vmatpush.bf16.msra.mxu1 %v1490_v4  ;;  %v2032_v4 = vld [vmem:[%s2591_s30 + $0x3f4] sm:$0xf]  ;;  %v1799_v56 = vld [vmem:[%s2591_s30 + $0x338] sm:$0xf0]  ;;  %v1738_v60 = vor.u32 %v1992_v52, %v1735_v54  ;;  %v1647_v23 = vld [vmem:[%s2591_s30 + $0x208] sm:$0xf0] }
  0x9b   : > { %1163 = vmatpush.bf16.msra.mxu2 %v1554_v5  ;;  %v1895_v5 = vld [vmem:[%s2591_s30 + $0x3f8] sm:$0xf0]  ;;  %s1247_s24 = scalar_lea.sflag [#allocation4], %s218_s26  ;;  %s2244_s11 = sshra.s32 %s1263_s19, 4  ;;  %s2245_s11 = int_to_ptr.hbm [resolvable:$true] %s2244_s11 }
  0x9c   : > { %1176 = vmatpush.bf16.msra.mxu3 %v1618_v9  ;;  %v1834_v9 = vor.u32 %v2016_v0, %v1831_v1  ;;  %v1898_v13 = vor.u32 %v2032_v4, %v1895_v5  ;;  %v1990_v0 = vld [vmem:[%s2591_s30 + $0x2a4] sm:$0xf]  ;;  %v1866_v1 = vor.u32 %v2024_v57, %v1863_v58  ;;  %v1791_v4 = vld [vmem:[%s2591_s30 + $0x328] sm:$0xf0]  ;;  %s2246_s3 = scalar_lea.hbm %s2245_s11, 4  ;;  %s2250_s6 = scalar_lea.hbm %s2969_s2, 8 }
  0x9d   : > { %1138 = vmatpush.bf16.msra.mxu0 %v1418_v15  ;;  %v2014_v15 = vld [vmem:[%s2591_s30 + $0x364] sm:$0xf]  ;;  %p2247_p8 = scmp.ne.s32.totalorder %s2245_s11, %s2246_s3  ;;  %p2251_p5 = scmp.lt.s32.totalorder %s2245_s11, %s2969_s2 }
  0x9e   : > { %1151 = vmatpush.bf16.msra.mxu1 %v1482_v16  ;;  %v1823_v16 = vld [vmem:[%s2591_s30 + $0x368] sm:$0xf0]  ;;  %v2022_v5 = vld [vmem:[%s2591_s30 + $0x3a4] sm:$0xf]  ;;  %p2252_p2 = scmp.lt.s32.totalorder %s2250_s6, %s2246_s3 }
  0x9f   : > { %1164 = vmatpush.bf16.msra.mxu2 %v1546_v17  ;;  %v2030_v17 = vld [vmem:[%s2591_s30 + $0x3e4] sm:$0xf]  ;;  %p2248_p13 = pnand %p2247_p8, %p2540_p6 }
  0xa0   : > { %1177 = vmatpush.bf16.msra.mxu3 %v1610_v21  ;;  %v1826_v21 = vor.u32 %v2014_v15, %v1823_v16  ;;  %v1890_v25 = vor.u32 %v2030_v17, %v1887_v18  ;;  %v2004_v15 = vld [vmem:[%s2591_s30 + $0x314] sm:$0xf]  ;;  %v1783_v16 = vld [vmem:[%s2591_s30 + $0x318] sm:$0xf0]  ;;  %p2253_p7 = por %p2252_p2, %p2251_p5 }
  0xa1   : > { %1139 = vmatpush.bf16.msra.mxu0 %v1410_v29  ;;  %v2012_v29 = vld [vmem:[%s2591_s30 + $0x354] sm:$0xf]  ;;  %v1847_v18 = vld [vmem:[%s2591_s30 + $0x398] sm:$0xf0]  ;;  %p2249_p0 = pneg %p2248_p13 }
  0xa2   : > { %1152 = vmatpush.bf16.msra.mxu1 %v1474_v30  ;;  %v1815_v30 = vld [vmem:[%s2591_s30 + $0x358] sm:$0xf0]  ;;  %v2020_v17 = vld [vmem:[%s2591_s30 + $0x394] sm:$0xf] }
  0xa3   : > { %1165 = vmatpush.bf16.msra.mxu2 %v1538_v31  ;;  %v2028_v31 = vld [vmem:[%s2591_s30 + $0x3d4] sm:$0xf]  ;;  %v1818_v36 = vor.u32 %v2012_v29, %v1815_v30  ;;  %v2002_v29 = vld [vmem:[%s2591_s30 + $0x304] sm:$0xf]  ;;  %v1775_v30 = vld [vmem:[%s2591_s30 + $0x308] sm:$0xf0]  ;;  %p2254_p10 = pnand %p2253_p7, %p2249_p0 }
  0xa4   : > { %1178 = vmatpush.bf16.msra.mxu3 %v1602_v38  ;;  %v1978_v38 = vld [vmem:[%s2591_s30 + $0x244] sm:$0xf] }
  0xa5   : > { %1140 = vmatpush.bf16.msra.mxu0 %v1402_v47  ;;  %v1682_v47 = vor.u32 %v1978_v38, %v1679_v39 }
  0xa6   : > { %1153 = vmatpush.bf16.msra.mxu1 %v1466_v50  ;;  %v1976_v50 = vld [vmem:[%s2591_s30 + $0x234] sm:$0xf] }
  0xa7   : > { %1166 = vmatpush.bf16.msra.mxu2 %v1530_v51  ;;  %v1671_v51 = vld [vmem:[%s2591_s30 + $0x238] sm:$0xf0] }
  0xa8   : > { %1179 = vmatpush.bf16.msra.mxu3 %v1594_v55  ;;  %v2008_v55 = vld [vmem:[%s2591_s30 + $0x334] sm:$0xf]  ;;  %v1674_v59 = vor.u32 %v1976_v50, %v1671_v51 }
  0xa9   : > { %1141 = vmatpush.bf16.msra.mxu0 %v1394_v62  ;;  %v1802_v61 = vor.u32 %v2008_v55, %v1799_v56  ;;  %v1974_v62 = vld [vmem:[%s2591_s30 + $0x224] sm:$0xf] }
  0xaa   : > { %1154 = vmatpush.bf16.msra.mxu1 %v1458_v2  ;;  %v1727_v2 = vld [vmem:[%s2591_s30 + $0x2a8] sm:$0xf0] }
  0xab   : > { %1167 = vmatpush.bf16.msra.mxu2 %v1522_v3  ;;  %v2006_v3 = vld [vmem:[%s2591_s30 + $0x324] sm:$0xf] }
  0xac   : > { %1180 = vmatpush.bf16.msra.mxu3 %v1586_v6  ;;  %1142 = vmatmul.bf16.vlgmr.msra.gmra.mxu0 %v2710_v27  ;;  %v1882_v27 = vor.u32 %v2028_v31, %v1879_v34  ;;  %v1855_v6 = vld [vmem:[%s2591_s30 + $0x3a8] sm:$0xf0]  ;;  %v2018_v31 = vld [vmem:[%s2591_s30 + $0x384] sm:$0xf] }
  0xad   : > { %1186 = vmatpush.bf16.msrb.mxu0 %v1706_v7  ;;  %1155 = vmatmul.bf16.vlgmr.msra.gmra.mxu1 %v2716_v33  ;;  %v1871_v33 = vld [vmem:[%s2591_s30 + $0x3c8] sm:$0xf0]  ;;  %v1666_v7 = vor.u32 %v1974_v62, %v1663_v63 }
  0xae   : > { %1199 = vmatpush.bf16.msrb.mxu1 %v1770_v8  ;;  %1168 = vmatmul.bf16.vlgmr.msra.gmra.mxu2 %v2708_v26  ;;  %v1754_v26 = vor.u32 %v1996_v24, %v1751_v28  ;;  %v1874_v53 = vor.u32 %v2026_v46, %v1871_v33  ;;  %v1730_v8 = vor.u32 %v1990_v0, %v1727_v2  ;;  %v1986_v24 = vld [vmem:[%s2591_s30 + $0x284] sm:$0xf]  ;;  %v1711_v28 = vld [vmem:[%s2591_s30 + $0x288] sm:$0xf0] }
  0xaf   : > { %1212 = vmatpush.bf16.msrb.mxu2 %v1834_v9  ;;  %1181 = vmatmul.bf16.vlgmr.msra.gmra.mxu3 %v2714_v32  ;;  %v2010_v32 = vld [vmem:[%s2591_s30 + $0x344] sm:$0xf]  ;;  %v1794_v9 = vor.u32 %v2006_v3, %v1791_v4  ;;  %v1839_v34 = vld [vmem:[%s2591_s30 + $0x388] sm:$0xf0] }
  0xb0   : > { %1225 = vmatpush.bf16.msrb.mxu3 %v1898_v13  ;;  %v1810_v49 = vor.u32 %v2010_v32, %v1807_v45  ;;  %v1858_v13 = vor.u32 %v2022_v5, %v1855_v6  ;;  %v1842_v38 = vor.u32 %v2018_v31, %v1839_v34 }
  0xb1   : > { %1187 = vmatpush.bf16.msrb.mxu0 %v1698_v19  ;;  %v1658_v19 = vor.u32 %v1972_v10, %v1655_v11 }
  0xb2   : > { %1200 = vmatpush.bf16.msrb.mxu1 %v1762_v20  ;;  %v1722_v20 = vor.u32 %v1988_v12, %v1719_v14 }
  0xb3   : > { %1213 = vmatpush.bf16.msrb.mxu2 %v1826_v21  ;;  %v1786_v21 = vor.u32 %v2004_v15, %v1783_v16  ;;  %v230_v16 = vld [vmem:[%s2600_s7] sm:$0xf] }
  0xb4   : > { %1226 = vmatpush.bf16.msrb.mxu3 %v1890_v25  ;;  %v1850_v25 = vor.u32 %v2020_v17, %v1847_v18 }
  0xb5   : > { %1188 = vmatpush.bf16.msrb.mxu0 %v1690_v35  ;;  %v1650_v35 = vor.u32 %v1970_v22, %v1647_v23 }
  0xb6   : > { %1201 = vmatpush.bf16.msrb.mxu1 %v1754_v26  ;;  %v1714_v26 = vor.u32 %v1986_v24, %v1711_v28 }
  0xb7   : > { %1214 = vmatpush.bf16.msrb.mxu2 %v1818_v36  ;;  %v1778_v36 = vor.u32 %v2002_v29, %v1775_v30 }
  0xb8   : > { %1227 = vmatpush.bf16.msrb.mxu3 %v1882_v27 }
  0xb9   : > { %1189 = vmatpush.bf16.msrb.mxu0 %v1682_v47 }
  0xba   : > { %1202 = vmatpush.bf16.msrb.mxu1 %v1746_v48 }
  0xbb   : > { %1215 = vmatpush.bf16.msrb.mxu2 %v1810_v49 }
  0xbc   : > { %1228 = vmatpush.bf16.msrb.mxu3 %v1874_v53 }
  0xbd   : > { %1190 = vmatpush.bf16.msrb.mxu0 %v1674_v59 }
  0xbe   : > { %1203 = vmatpush.bf16.msrb.mxu1 %v1738_v60 }
  0xbf   : > { %1216 = vmatpush.bf16.msrb.mxu2 %v1802_v61 }
  0xc0   : > { %1229 = vmatpush.bf16.msrb.mxu3 %v1866_v1 }
  0xc1   : > { %1191 = vmatpush.bf16.msrb.mxu0 %v1666_v7 }
  0xc2   : > { %1204 = vmatpush.bf16.msrb.mxu1 %v1730_v8 }
  0xc3   : > { %1217 = vmatpush.bf16.msrb.mxu2 %v1794_v9 }
  0xc4   : > { %1230 = vmatpush.bf16.msrb.mxu3 %v1858_v13 }
  0xc5   : > { %1192 = vmatpush.bf16.msrb.mxu0 %v1658_v19 }
  0xc6   : > { %1205 = vmatpush.bf16.msrb.mxu1 %v1722_v20 }
  0xc7   : > { %1218 = vmatpush.bf16.msrb.mxu2 %v1786_v21 }
  0xc8   : > { %1231 = vmatpush.bf16.msrb.mxu3 %v1850_v25 }
  0xc9   : > { %1193 = vmatpush.bf16.msrb.mxu0 %v1650_v35 }
  0xca   : > { %1206 = vmatpush.bf16.msrb.mxu1 %v1714_v26 }
  0xcb   : > { %1219 = vmatpush.bf16.msrb.mxu2 %v1778_v36 }
  0xcc   : > { %1232 = vmatpush.bf16.msrb.mxu3 %v1842_v38  ;;  %1194 = vmatmul.bf16.vlgmr.msrb.gmra.mxu0 %v2766_v40 }
  0xcd   : > { %1207 = vmatmul.bf16.vlgmr.msrb.gmra.mxu1 %v2770_v43 }
  0xce   : > { %1220 = vmatmul.bf16.vlgmr.msrb.gmra.mxu2 %v2762_v37 }
  0xcf   : > { %1233 = vmatmul.bf16.vlgmr.msrb.gmra.mxu3 %v2768_v41 }
  0xef   : > { %v1039_v39 = vpop.f32.mrf.mxu0 }
  0xf1   : > { %v1052_v42 = vpop.f32.mrf.mxu1 }
  0xf2   : > { %v1053_v27 = vadd.f32 %v1052_v42, %v1039_v39 }
  0xf4   : > { %v1065_v44 = vpop.f32.mrf.mxu2 }
  0xf5   : > { %v1066_v32 = vadd.f32 %v1065_v44, %v1053_v27 }
  0xf6   : > { %v1078_v45 = vpop.f32.mrf.mxu3 }
  0xf7   : > { %v1079_v46 = vadd.f32 %v1078_v45, %v1066_v32  ;;  %v1041_v33 = vpop.f32.mrf.mxu0 }
  0xf9   : > { %v1054_v47 = vpop.f32.mrf.mxu1 }
  0xfc   : > { %v1067_v48 = vpop.f32.mrf.mxu2 }
  0xfe   : > { %v1080_v49 = vpop.f32.mrf.mxu3 }
 0x109   : > { %v1091_v50 = vpop.f32.mrf.mxu0 }
 0x10a   : > { %v1092_v51 = vadd.f32 %v1091_v50, %v1079_v46  ;;  %v1104_v40 = vpop.f32.mrf.mxu1 }
 0x10c   : > { %v1105_v52 = vadd.f32 %v1104_v40, %v1092_v51 }
 0x111   : > { %v1117_v43 = vpop.f32.mrf.mxu2  ;;  %v1093_v37 = vpop.f32.mrf.mxu0 }
 0x112   : > { %v1130_v53 = vpop.f32.mrf.mxu3  ;;  %v1106_v54 = vpop.f32.mrf.mxu1  ;;  %v1118_v8 = vadd.f32 %v1117_v43, %v1105_v52 }
 0x114   : > { %v1131_v14 = vadd.f32 %v1130_v53, %v1118_v8 }
 0x119   : > { %v1119_v41 = vpop.f32.mrf.mxu2 }
 0x11a   : > { %v1132_v55 = vpop.f32.mrf.mxu3 }
 0x129   : > { %v1143_v56 = vpop.f32.mrf.mxu0 }
 0x12a   : > { %v1156_v57 = vpop.f32.mrf.mxu1 }
 0x12b   : > { %v1157_v0 = vadd.f32 %v1156_v57, %v1143_v56 }
 0x131   : > { %v1169_v58 = vpop.f32.mrf.mxu2  ;;  %v1145_v60 = vpop.f32.mrf.mxu0 }
 0x132   : > { %v1182_v59 = vpop.f32.mrf.mxu3  ;;  %v1158_v61 = vpop.f32.mrf.mxu1  ;;  %v1170_v1 = vadd.f32 %v1169_v58, %v1157_v0 }
 0x134   : > { %v1183_v2 = vadd.f32 %v1182_v59, %v1170_v1 }
 0x139   : > { %v1171_v62 = vpop.f32.mrf.mxu2 }
 0x13a   : > { %v1184_v63 = vpop.f32.mrf.mxu3 }
 0x149   : > { %v1195_v3 = vpop.f32.mrf.mxu0 }
 0x14a   : > { %v1208_v4 = vpop.f32.mrf.mxu1  ;;  %v1196_v5 = vadd.f32 %v1195_v3, %v1183_v2 }
 0x14c   : > { %v1209_v6 = vadd.f32 %v1208_v4, %v1196_v5 }
 0x151   : > { %v1221_v7 = vpop.f32.mrf.mxu2  ;;  %v1197_v11 = vpop.f32.mrf.mxu0 }
 0x152   : > { %v1222_v9 = vadd.f32 %v1221_v7, %v1209_v6  ;;  %v1234_v10 = vpop.f32.mrf.mxu3  ;;  %v1210_v12 = vpop.f32.mrf.mxu1 }
 0x154   : > { %v1235_v13 = vadd.f32 %v1234_v10, %v1222_v9 }
 0x156   : > { %v1240_v15 = vrot.slane %v1235_v13, 6 }
 0x158   : > { %v1242_v17 = vsel %vm1241_vm0, %v1131_v14, %v1240_v15 }
 0x159   : > { %v1223_v18 = vpop.f32.mrf.mxu2  ;;  %v1244_v19 = vadd.f32 %v1242_v17, %v230_v16 }
 0x15a   : > { %v1236_v20 = vpop.f32.mrf.mxu3 }
 0x15b   : > { %1245 = vst [vmem:[%s2600_s7] sm:$0xf] %v1244_v19 }
 0x15c   : > { %2257 = shalt.err (!%p2254_p10)
}
 0x15d   : > { %2039 = dma.vmem_to_hbm [thread:$0]  (%p2540_p6), %s1261_s15, 64, %s1263_s19, %s1247_s24  }
 0x15e PF: > { %s2998_s20 = sld [smem:[#allocation11_spill]]  ;;  %p2053_p11 = scmp.ge.s32.totalorder %s2380_s22, 2 }
 0x160   : > { %p2049_p12 = pnand %p2053_p11, %p2545_p9 }
 0x162   : > { %p2050_p1 = pneg %p2049_p12 }
 0x164   : > { %s1274_s9 = sand.u32 1, %s2998_s20  }
 0x165   : > { %s1275_s17 = scalar_lea.sflag [#allocation4], %s1274_s9 }
 0x166   : > { %2323 = dma.done.wait (%p2050_p1), %s1275_s17, 64  }
 0x167   : > { %2325 = vsyncadd (%p2050_p1), %s1275_s17, 4294967232  ;;  %s21_s22 = sadd.s32 1, %s2380_s22   ;;  %s3001_s12 = sld [smem:[#allocation12_spill]] }
 0x168   : > { %p2920_p4 = scmp.ge.s32.totalorder %s21_s22, 8   ;;  %s3002_s11 = sld [smem:[#allocation19_spill]] }
 0x169   : > { %s3003_s26 = sld [smem:[#allocation18_spill]]  ;;  %s3009_s9 = smov %s2332_s10 }
 0x16a   : > { %s3004_s23 = sld [smem:[#allocation13_spill]]  ;;  %s3014_s15 = smov %s2356_s16 }
 0x16b   : > { %s3005_s17 = sld [smem:[#allocation17_spill]]  ;;  %s3016_s19 = smov %s2376_s21 }
 0x16c   : > { %s3006_s18 = sld [smem:[#allocation14_spill]] }
 0x16d   : > { %s3007_s20 = sld [smem:[#allocation15_spill]]  ;;  %s3010_s10 = smov %s3001_s12 }
 0x16e   : > { %s3008_s7 = sld [smem:[#allocation16_spill]]  ;;  %s3011_s12 = smov %s2344_s13 }
 0x16f   : > { %s3012_s13 = smov %s2348_s14  ;;  %s3013_s14 = smov %s3003_s26 }
 0x170   : > { %s3015_s16 = smov %s3004_s23  ;;  %20 = sbr.rel (!%p2920_p4) target bundleno = 14 (0xe), region = 91 }
 0x174   : > { %s3017_s21 = smov %s3008_s7 }
 0x175   :  { %1281 = vsyncpa [#allocation3], 1 }
 0x176   :  { %1283 = vsyncpa [#allocation3 + $0x1], 1 }
 0x177   :  { %1284 = vsyncpa [#allocation6], 1 }
 0x178   :  { %1286 = vsyncpa [#allocation6 + $0x1], 1 }
 0x179   :  { %1287 = vsyncpa [#allocation4], 1 }
 0x17a   :  { %1289 = vsyncpa [#allocation4 + $0x1], 1 }

</bundles_post_ra>
